<compile_context>
chip_gen: v7x
topology: tpu7x:2x2x1
jax: 0.10.0
libtpu: 0.0.40
codegen_flags: <defaults>
</compile_context>

<pallas_src>
import numpy as np
import jax
import jax.numpy as jnp
from jax.experimental import pallas as pl
from jax.experimental.pallas import tpu as pltpu

SCALE = 10.0 / np.log(10.0)
EPS = 1e-8

LANES = 128
MAX_TILE_ROWS = 2048  # 2048 * 128 * 4B = 1 MiB per input block (f32)


def _round_up(x, m):
    return -(-x // m) * m


def psnr_loss(pred, target, loss_weight=1.0):
    assert pred.shape == target.shape
    N = pred.shape[0]
    D = int(np.prod(pred.shape[1:]))

    # Flatten per-sample dims; contiguous NCHW -> free reshape.
    p = pred.reshape(N, D)
    t = target.reshape(N, D)

    # Tile the flattened axis into lane-dense (tile_rows, 128) chunks.
    rows = _round_up(pl.cdiv(D, LANES), 8)
    tile_rows = min(MAX_TILE_ROWS, rows)
    rows_pad = _round_up(rows, tile_rows)
    num_chunks = rows_pad // tile_rows

    pad = rows_pad * LANES - D
    if pad:
        # Zero padding on BOTH inputs -> zero diff -> no effect on the sum.
        p = jnp.pad(p, ((0, 0), (0, pad)))
        t = jnp.pad(t, ((0, 0), (0, pad)))
    p = p.reshape(N, rows_pad, LANES)
    t = t.reshape(N, rows_pad, LANES)

    inv_d = np.float32(1.0 / D)  # trace-time constant (true element count)

    def kernel(pred_ref, target_ref, out_ref, acc_ref):
        j = pl.program_id(1)

        @pl.when(j == 0)
        def _():
            acc_ref[...] = jnp.zeros_like(acc_ref)

        d = pred_ref[...].astype(jnp.float32) - target_ref[...].astype(jnp.float32)
        acc_ref[...] += d * d  # pure-VPU partial sums; no cross-lane work per chunk

        @pl.when(j == num_chunks - 1)
        def _():
            mse = jnp.sum(acc_ref[...]) * inv_d  # single XLU reduce per sample
            val = jnp.log(mse + jnp.float32(EPS))
            out_ref[...] = jnp.full(out_ref.shape, val, dtype=out_ref.dtype)

    out = pl.pallas_call(
        kernel,
        out_shape=jax.ShapeDtypeStruct((N, 8, LANES), jnp.float32),
        grid_spec=pltpu.PrefetchScalarGridSpec(
            num_scalar_prefetch=0,
            grid=(N, num_chunks),
            in_specs=[
                pl.BlockSpec((1, tile_rows, LANES), lambda i, j: (i, j, 0)),
                pl.BlockSpec((1, tile_rows, LANES), lambda i, j: (i, j, 0)),
            ],
            out_specs=pl.BlockSpec((1, 8, LANES), lambda i, j: (i, 0, 0)),
            scratch_shapes=[pltpu.VMEM((1, tile_rows, LANES), jnp.float32)],
        ),
        compiler_params=pltpu.CompilerParams(
            dimension_semantics=("parallel", "arbitrary"),
            vmem_limit_bytes=32 * 1024 * 1024,
        ),
    )(p, t)

    per_sample = out[:, 0, 0]  # log(mse_i + eps) per sample
    return jnp.float32(loss_weight * SCALE) * jnp.mean(per_sample)


def psnr_loss_ref(pred, target, loss_weight=1.0):
    # Pure-JAX reference mirroring the PyTorch forward.
    mse = jnp.mean((pred - target) ** 2, axis=(1, 2, 3))
    return loss_weight * SCALE * jnp.mean(jnp.log(mse + EPS))


if __name__ == "__main__":
    key = jax.random.PRNGKey(0)
    k1, k2 = jax.random.split(key)
    N, C, H, W = 2, 4, 16, 16
    pred = jax.random.uniform(k1, (N, C, H, W), dtype=jnp.float32)
    target = jax.random.uniform(k2, (N, C, H, W), dtype=jnp.float32)

    loss = jax.block_until_ready(psnr_loss(pred, target))
    ref = jax.block_until_ready(psnr_loss_ref(pred, target))

    assert np.allclose(np.asarray(loss), np.asarray(ref), rtol=1e-5, atol=1e-5), (
        loss, ref)
    print("KERNEL_OK")
</pallas_src>

<mosaic_0001>
module attributes {stable_mosaic.version = 11 : i64} {
  func.func @kernel(%arg0: i32, %arg1: i32, %arg2: memref<1x8x128xf32, #tpu.memory_space<vmem>>, %arg3: memref<1x8x128xf32, #tpu.memory_space<vmem>>, %arg4: memref<1x8x128xf32, #tpu.memory_space<vmem>>, %arg5: memref<1x8x128xf32, #tpu.memory_space<vmem>>) attributes {dimension_semantics = [#tpu.dimension_semantics<parallel>, #tpu.dimension_semantics<arbitrary>], iteration_bounds = array<i64: 2, 1>, scalar_prefetch = 0 : i64, scratch_operands = 1 : i64, tpu.core_type = #tpu.core_type<tc>, window_params = [{transform_indices = @transform_0, window_bounds = array<i64: 1, 8, 128>}, {transform_indices = @transform_1, window_bounds = array<i64: 1, 8, 128>}, {transform_indices = @transform_2, window_bounds = array<i64: 1, 8, 128>}]} {
    %c0_i32 = arith.constant 0 : i32
    %0 = arith.cmpi eq, %arg1, %c0_i32 : i32
    %1 = arith.extui %0 : i1 to i32
    %c0_i32_0 = arith.constant 0 : i32
    %2 = arith.cmpi ne, %1, %c0_i32_0 : i32
    scf.if %2 {
      %cst = arith.constant 0.000000e+00 : f32
      %13 = vector.broadcast %cst : f32 to vector<1x8x128xf32>
      %c0_14 = arith.constant 0 : index
      %c0_15 = arith.constant 0 : index
      %c0_16 = arith.constant 0 : index
      %14 = vector.load %arg5[%c0_14, %c0_15, %c0_16] : memref<1x8x128xf32, #tpu.memory_space<vmem>>, vector<1x8x128xf32>
      tpu.vector_store %arg5[%c0_14, %c0_15, %c0_16], %13 {strides = array<i32>} : memref<1x8x128xf32, #tpu.memory_space<vmem>>, vector<1x8x128xf32>,
    } else {
    }
    %c0 = arith.constant 0 : index
    %c0_1 = arith.constant 0 : index
    %c0_2 = arith.constant 0 : index
    %3 = vector.load %arg2[%c0, %c0_1, %c0_2] : memref<1x8x128xf32, #tpu.memory_space<vmem>>, vector<1x8x128xf32>
    %c0_3 = arith.constant 0 : index
    %c0_4 = arith.constant 0 : index
    %c0_5 = arith.constant 0 : index
    %4 = vector.load %arg3[%c0_3, %c0_4, %c0_5] : memref<1x8x128xf32, #tpu.memory_space<vmem>>, vector<1x8x128xf32>
    %5 = arith.subf %3, %4 : vector<1x8x128xf32>
    %c0_6 = arith.constant 0 : index
    %c0_7 = arith.constant 0 : index
    %c0_8 = arith.constant 0 : index
    %6 = vector.load %arg5[%c0_6, %c0_7, %c0_8] : memref<1x8x128xf32, #tpu.memory_space<vmem>>, vector<1x8x128xf32>
    %7 = arith.mulf %5, %5 : vector<1x8x128xf32>
    %8 = arith.addf %6, %7 : vector<1x8x128xf32>
    %c0_9 = arith.constant 0 : index
    %c0_10 = arith.constant 0 : index
    %c0_11 = arith.constant 0 : index
    %9 = vector.load %arg5[%c0_9, %c0_10, %c0_11] : memref<1x8x128xf32, #tpu.memory_space<vmem>>, vector<1x8x128xf32>
    tpu.vector_store %arg5[%c0_9, %c0_10, %c0_11], %8 {strides = array<i32>} : memref<1x8x128xf32, #tpu.memory_space<vmem>>, vector<1x8x128xf32>,
    %c0_i32_12 = arith.constant 0 : i32
    %10 = arith.cmpi eq, %arg1, %c0_i32_12 : i32
    %11 = arith.extui %10 : i1 to i32
    %c0_i32_13 = arith.constant 0 : i32
    %12 = arith.cmpi ne, %11, %c0_i32_13 : i32
    scf.if %12 {
      %c0_14 = arith.constant 0 : index
      %c0_15 = arith.constant 0 : index
      %c0_16 = arith.constant 0 : index
      %13 = vector.load %arg5[%c0_14, %c0_15, %c0_16] : memref<1x8x128xf32, #tpu.memory_space<vmem>>, vector<1x8x128xf32>
      %14 = vector.shape_cast %13 : vector<1x8x128xf32> to vector<1x1x8x128xf32>
      %cst = arith.constant dense<0.000000e+00> : vector<1xf32>
      %15 = vector.multi_reduction <add>, %14, %cst [1, 2, 3] : vector<1x1x8x128xf32> to vector<1xf32>
      %16 = vector.shape_cast %15 : vector<1xf32> to vector<1x1x1x1xf32>
      %17 = vector.extract %16[0, 0, 0, 0] : f32 from vector<1x1x1x1xf32>
      %cst_17 = arith.constant 9.765625E-4 : f32
      %18 = arith.mulf %17, %cst_17 : f32
      %cst_18 = arith.constant 9.99999993E-9 : f32
      %19 = arith.addf %18, %cst_18 : f32
      %20 = math.log %19 : f32
      %21 = vector.broadcast %20 : f32 to vector<1x8x128xf32>
      %c0_19 = arith.constant 0 : index
      %c0_20 = arith.constant 0 : index
      %c0_21 = arith.constant 0 : index
      %22 = vector.load %arg4[%c0_19, %c0_20, %c0_21] : memref<1x8x128xf32, #tpu.memory_space<vmem>>, vector<1x8x128xf32>
      tpu.vector_store %arg4[%c0_19, %c0_20, %c0_21], %21 {strides = array<i32>} : memref<1x8x128xf32, #tpu.memory_space<vmem>>, vector<1x8x128xf32>,
    } else {
    }
    return
  }
  func.func @transform_0(%arg0: i32, %arg1: i32) -> (i32, i32, i32) {
    %c0_i32 = arith.constant 0 : i32
    %c0_i32_0 = arith.constant 0 : i32
    return %arg0, %arg1, %c0_i32 : i32, i32, i32
  }
  func.func @transform_1(%arg0: i32, %arg1: i32) -> (i32, i32, i32) {
    %c0_i32 = arith.constant 0 : i32
    %c0_i32_0 = arith.constant 0 : i32
    return %arg0, %arg1, %c0_i32 : i32, i32, i32
  }
  func.func @transform_2(%arg0: i32, %arg1: i32) -> (i32, i32, i32) {
    %c0_i32 = arith.constant 0 : i32
    %c0_i32_0 = arith.constant 0 : i32
    %c0_i32_1 = arith.constant 0 : i32
    return %arg0, %c0_i32, %c0_i32_0 : i32, i32, i32
  }
}

</mosaic_0001>

<bundles_post_ra>
// kernel: tpu_custom_call.1
= control target key start
LH: loop header
LB: loop body
LE: loop exit
PB: predicated region body
PF: predicated region fallthrough
CT: control target
= control target key end

     0   :  { %7 = vsyncpa [#allocation4], 0  ;;  %s844_s0 = inlined_call_operand.hbm [shape: f32[2,8,128], index: 0, kind: input, shape index: {}]   ;;  %s845_s1 = inlined_call_operand.hbm [shape: f32[2,8,128], index: 1, kind: input, shape index: {}]   ;;  %s846_s2 = inlined_call_operand.hbm [shape: f32[2,8,128], index: 2, kind: output, shape index: {}]  }
   0x1   :  { %9 = vsyncpa [#allocation4 + $0x1], 0 }
   0x2   :  { %10 = vsyncpa [#allocation7], 0 }
   0x3   :  { %12 = vsyncpa [#allocation7 + $0x1], 0 }
   0x4   :  { %13 = vsyncpa [#allocation5], 0 }
   0x5   :  { %15 = vsyncpa [#allocation5 + $0x1], 0  ;;  %s619_s9 = smov 0   ;;  %s621_s10 = smov 0  }
   0x6   :  { %s623_s11 = smov 0   ;;  %s625_s12 = smov 0  }
   0x7   :  { %s627_s13 = smov 0   ;;  %s629_s14 = smov 0  }
   0x8 LB: > { %s364_s15 = sadd.s32 4294967295, %s599_s14   ;;  %s365_s16 = sadd.s32 4294967294, %s599_s14   ;;  %s599_s14 = sphi %s629_s14, %s21_s14   ;;  %s595_s13 = sphi %s627_s13, %s866_s13   ;;  %s591_s12 = sphi %s625_s12, %s865_s12   ;;  %s587_s11 = sphi %s623_s11, %s864_s11   ;;  %s583_s10 = sphi %s621_s10, %s863_s10   ;;  %s579_s9 = sphi %s619_s9, %s862_s9  }
   0x9   : > { %s33_s17 = sadd.s32 1, %s595_s13  ;;  %s42_s18 = sadd.s32 1, %s587_s11 }
   0xa   : > { %p35_p0 = scmp.ge.s32.totalorder %s33_s17, 2  ;;  %p49_p1 = scmp.ne.s32.totalorder %s587_s11, %s583_s10 }
   0xb   : > { %p50_p2 = scmp.eq.s32.totalorder %s599_s14, 0  ;;  %p55_p3 = scmp.ne.s32.totalorder %s583_s10, %s579_s9 }
   0xc   : > { %s868_s17 = smov (%p35_p0, %s33_s17), 0  ;;  %p56_p5 = scmp.eq.s32.totalorder %s364_s15, 0 }
   0xd   : > { %p660_p4 = por %p50_p2, %p49_p1  ;;  %s37_s20 = ssub.s32 %s595_s13, %s868_s17 }
   0xe   : > { %p107_p6 = scmp.eq.s32.totalorder %s364_s15, 1  ;;  %p40_p7 = scmp.eq.s32.totalorder %s37_s20, 0 }
   0xf   : > { %p666_p8 = por %p56_p5, %p55_p3  ;;  %p113_p10 = scmp.eq.s32.totalorder %s365_s16, 1 }
  0x10   : > { %p670_p9 = por %p107_p6, %p49_p1  ;;  %p401_p13 = scmp.lt.s32.totalorder %s599_s14, 2 }
  0x11   : > { %s850_s21 = scalar_select %p666_p8, 1, 0 }
  0x12   : > { %s851_s22 = scalar_select %p670_p9, 1, 0 }
  0x13   : > { %s675_s23 = scalar_select %p40_p7, %s587_s11, %s42_s18  }
  0x14   : > { %p677_p11 = por %p113_p10, %p55_p3  ;;  %s684_s25 = sand.u32 1, %s587_s11  }
  0x15   : > { %s368_s26 = sshll.u32 %s684_s25, 3  ;;  %s369_s27 = sshll.u32 %s595_s13, 7 }
  0x16   : > { %s852_s24 = scalar_select %p677_p11, 1, 0 }
  0x17   : > { %s693_s30 = scalar_lea.hbm %s844_s0, %s369_s27  ;;  %s137_s3 = scalar_lea.vmem [#allocation3], %s368_s26 }
  0x18   : > { %s145_s4 = sshll.u32 %s137_s3, 4  ;;  %p701_p0 = pnand %p401_p13, %p660_p4  ;;  %s697_s4 = int_to_ptr.vmem [resolvable:$true] %s145_s4 }
  0x19   : > { %s134_s6 = scalar_lea.sflag [#allocation4], %s684_s25  ;;  %s453_s7 = scalar_lea.hbm %s693_s30, 128 }
  0x1a   : > { %p454_p3 = scmp.ne.s32.totalorder %s693_s30, %s453_s7  ;;  %p455_p5 = pneg %p701_p0 }
  0x1b   : > { %s458_s16 = scalar_lea.hbm %s844_s0, 256  ;;  %p459_p4 = scmp.lt.u32.totalorder %s693_s30, %s844_s0 }
  0x1c   : > { %p456_p6 = pnand %p455_p5, %p454_p3  ;;  %p460_p10 = scmp.lt.u32.totalorder %s458_s16, %s453_s7 }
  0x1d   : > { %p462_p12 = scmp.lt.u32.totalorder %s453_s7, %s693_s30 }
  0x1e   : > { %p457_p7 = pneg %p456_p6  ;;  %p461_p13 = por %p460_p10, %p459_p4 }
  0x20   : > { %p463_p1 = por %p462_p12, %p461_p13 }
  0x22   : > { %p464_p2 = pnand %p463_p1, %p457_p7 }
  0x24   : > { %467 = shalt.err (!%p464_p2)
}
  0x25   : > { %s468_s20 = scalar_lea.vmem %s697_s4, 128  ;;  %s601_s28 = smov [#allocation3]  }
  0x26   : > { %p469_p3 = scmp.ne.s32.totalorder %s697_s4, %s468_s20  ;;  %s473_s29 = sshll.u32 %s601_s28, 4  ;;  %s474_s29 = int_to_ptr.vmem [resolvable:$false] %s473_s29 }
  0x27   : > { %s475_s3 = scalar_lea.vmem %s474_s29, 256  ;;  %p476_p9 = scmp.lt.s32.totalorder %s697_s4, %s474_s29 }
  0x28   : > { %p471_p6 = pnand %p469_p3, %p455_p5  ;;  %p477_p4 = scmp.lt.s32.totalorder %s475_s3, %s468_s20 }
  0x2a   : > { %p472_p11 = pneg %p471_p6  ;;  %p478_p10 = por %p477_p4, %p476_p9 }
  0x2c   : > { %p479_p12 = pnand %p478_p10, %p472_p11 }
  0x2e   : > { %482 = shalt.err (!%p479_p12)
}
  0x2f   : > { %393 = dma.hbm_to_vmem [thread:$0]  (!%p701_p0), %s693_s30, 128, %s697_s4, %s134_s6  }
  0x30   : > { %p854_p1 = scmp.lt.s32.totalorder %s599_s14, 3  ;;  %p855_p2 = scmp.ge.s32.totalorder %s599_s14, 1 }
  0x31   : > { %s746_s16 = scalar_lea.hbm %s845_s1, %s369_s27  ;;  %s156_s18 = scalar_lea.vmem [#allocation6], %s368_s26 }
  0x32   : > { %p737_p7 = pnand %p855_p2, %p854_p1  ;;  %s164_s19 = sshll.u32 %s156_s18, 4  ;;  %s165_s19 = int_to_ptr.vmem [resolvable:$true] %s164_s19 }
  0x33   : > { %s153_s30 = scalar_lea.sflag [#allocation7], %s684_s25  ;;  %s483_s4 = scalar_lea.hbm %s746_s16, 128 }
  0x34   : > { %s856_s7 = scalar_select %p737_p7, 1, 0 }
  0x35   : > { %p484_p9 = scmp.ne.s32.totalorder %s746_s16, %s483_s4  ;;  %s488_s27 = scalar_lea.hbm %s845_s1, 256 }
  0x36   : > { %p489_p3 = scmp.lt.u32.totalorder %s746_s16, %s845_s1  ;;  %p490_p6 = scmp.lt.u32.totalorder %s488_s27, %s483_s4 }
  0x37   : > { %p486_p11 = pnand %p484_p9, %p455_p5  ;;  %p492_p10 = scmp.lt.u32.totalorder %s483_s4, %s746_s16 }
  0x38   : > { %p491_p4 = por %p490_p6, %p489_p3 }
  0x39   : > { %p487_p13 = pneg %p486_p11 }
  0x3a   : > { %p493_p12 = por %p492_p10, %p491_p4 }
  0x3c   : > { %p494_p1 = pnand %p493_p12, %p487_p13 }
  0x3e   : > { %497 = shalt.err (!%p494_p1)
}
  0x3f   : > { %s498_s25 = scalar_lea.vmem %s165_s19, 128  ;;  %s602_s26 = smov [#allocation6]  }
  0x40   : > { %p499_p2 = scmp.ne.s32.totalorder %s165_s19, %s498_s25  ;;  %s503_s3 = sshll.u32 %s602_s26, 4  ;;  %s504_s3 = int_to_ptr.vmem [resolvable:$false] %s503_s3 }
  0x41   : > { %s505_s8 = scalar_lea.vmem %s504_s3, 256  ;;  %p506_p8 = scmp.lt.s32.totalorder %s165_s19, %s504_s3 }
  0x42   : > { %p501_p9 = pnand %p499_p2, %p455_p5  ;;  %p507_p7 = scmp.lt.s32.totalorder %s505_s8, %s498_s25 }
  0x44   : > { %p502_p11 = pneg %p501_p9  ;;  %p508_p3 = por %p507_p7, %p506_p8 }
  0x46   : > { %p509_p6 = pnand %p508_p3, %p502_p11 }
  0x48   : > { %512 = shalt.err (!%p509_p6)
}
  0x49   : > { %396 = dma.hbm_to_vmem [thread:$0]  (!%p701_p0), %s746_s16, 128, %s165_s19, %s153_s30  }
  0x4a   : > { %p857_p13 = scmp.ne.s32.totalorder %s856_s7, 0 }
  0x4b   : > { %s773_s15 = sand.u32 (!%p857_p13), 1, %s583_s10   ;;  %p858_p8 = scmp.ne.s32.totalorder (!%p857_p13), %s850_s21, 0 }
  0x4c   : > { %173 = sbr.rel (%p857_p13) target bundleno = 378 (0x17a), region = 28  ;;  %s776_s18 = sshll.u32 (!%p857_p13), %s773_s15, 3 }
  0x4d   : > { %s176_s4 = scalar_lea.sflag (!%p857_p13), [#allocation4], %s773_s15  ;;  %s179_s6 = scalar_lea.vmem (!%p857_p13), [#allocation3], %s776_s18 }
  0x53   : > { %566 = dma.done.wait (%p858_p8), %s176_s4, 128  }
  0x54   : > { %568 = vsyncadd (%p858_p8), %s176_s4, 4294967168  ;;  %s185_s5 = scalar_lea.sflag [#allocation7], %s773_s15  ;;  %s188_s7 = scalar_lea.vmem [#allocation6], %s776_s18 }
  0x55   : > { %570 = dma.done.wait (%p858_p8), %s185_s5, 128  }
  0x56   : > { %572 = vsyncadd (%p858_p8), %s185_s5, 4294967168  ;;  %v219_v0 = vld [vmem:[%s179_s6] sm:$0xff]  ;;  %v220_v1 = vld [vmem:[%s188_s7] sm:$0xff]  ;;  %s213_s30 = scalar_lea.vmem [#allocation8], %s776_s18  ;;  %s377_s27 = sshll.u32 %s591_s12, 7 }
  0x57   : > { %v221_v2 = vsub.f32 %v219_v0, %v220_v1  ;;  %s261_s20 = sshll.u32 %s213_s30, 4  ;;  %s797_s26 = scalar_lea.hbm %s846_s2, %s377_s27  ;;  %s792_s20 = int_to_ptr.vmem [resolvable:$true] %s261_s20 }
  0x58   : > { %s248_s3 = scalar_lea.sflag [#allocation5], %s773_s15  ;;  %s513_s8 = scalar_lea.vmem %s792_s20, 128 }
  0x59   : > { %v223_v3 = vmul.f32 %v221_v2, %v221_v2  ;;  %p514_p0 = scmp.ne.s32.totalorder %s792_s20, %s513_s8  ;;  %p859_p5 = scmp.ne.s32.totalorder %s851_s22, 0 }
  0x5a   : > { %s603_s12 = smov [#allocation8]  }
  0x5b   : > { %230 = vadd.xlane.f32.xlu0 %v223_v3  ;;  %p515_p7 = pnand %p514_p0, %p859_p5  ;;  %s517_s18 = sshll.u32 %s603_s12, 4  ;;  %s518_s18 = int_to_ptr.vmem [resolvable:$false] %s517_s18 }
  0x5c   : > { %s519_s4 = scalar_lea.vmem %s518_s18, 256  ;;  %p520_p10 = scmp.lt.s32.totalorder %s792_s20, %s518_s18 }
  0x5d   : > { %p516_p4 = pneg %p515_p7  ;;  %p521_p12 = scmp.lt.s32.totalorder %s519_s4, %s513_s8 }
  0x5f   : > { %p522_p1 = por %p521_p12, %p520_p10 }
  0x61   : > { %p523_p2 = pnand %p522_p1, %p516_p4 }
  0xe8   : > { %v231_v4 = vpop.xlane.xlu0 %230 }
  0xe9   : > { %v232_v5 = vrot.slane %v231_v4, 4 }
  0xeb   : > { %v233_v6 = vadd.f32 %v232_v5, %v231_v4 }
  0xed   : > { %v234_v7 = vrot.slane %v233_v6, 2 }
  0xef   : > { %v235_v8 = vadd.f32 %v234_v7, %v233_v6 }
  0xf1   : > { %v236_v9 = vrot.slane %v235_v8, 1 }
  0xf3   : > { %v237_v10 = vadd.f32 %v236_v9, %v235_v8 }
  0xf5   : > { %380 = vpush %v237_v10 }
 0x126   : > { %s381_s16 = spop %380 }
 0x127   : > { %s239_s19 = smul.f32 0.0009765625, %s381_s16 }
 0x129   : > { %s240_s21 = sadd.f32 1e-08, %s239_s19 }
 0x12b   : > { %v241_v11 = vstv %s240_s21 }
 0x12c   : > { %451 = vlog2.f32 %v241_v11 }
 0x136   : > { %v452_v12 = vpop.eup %451 }
 0x137   : > { %v243_v13 = vmul.f32 0.6931472, %v452_v12 }
 0x139   : > { %382 = vpush %v243_v13 }
 0x16a   : > { %s383_s28 = spop %382 }
 0x16b   : > { %v245_v14 = vstv %s383_s28 }
 0x16c   : > { %246 = vst [vmem:[%s213_s30] sm:$0xff] %v245_v14 }
 0x16d   : > { %526 = shalt.err (!%p523_p2)
}
 0x16e   : > { %s527_s15 = scalar_lea.hbm %s797_s26, 128  ;;  %s531_s7 = scalar_lea.hbm %s846_s2, 256 }
 0x16f   : > { %p528_p9 = scmp.ne.s32.totalorder %s797_s26, %s527_s15  ;;  %p532_p6 = scmp.lt.u32.totalorder %s797_s26, %s846_s2 }
 0x170   : > { %p533_p13 = scmp.lt.u32.totalorder %s531_s7, %s527_s15  ;;  %p535_p0 = scmp.lt.u32.totalorder %s527_s15, %s797_s26 }
 0x171   : > { %p529_p11 = pnand %p528_p9, %p859_p5 }
 0x172   : > { %p534_p8 = por %p533_p13, %p532_p6 }
 0x173   : > { %p530_p3 = pneg %p529_p11 }
 0x174   : > { %p536_p7 = por %p535_p0, %p534_p8 }
 0x176   : > { %p537_p4 = pnand %p536_p7, %p530_p3 }
 0x178   : > { %540 = shalt.err (!%p537_p4)
}
 0x179   : > { %388 = dma.vmem_to_hbm [thread:$0]  (%p859_p5), %s792_s20, 128, %s797_s26, %s248_s3  }
 0x17a PF: > { %s273_s21 = sand.u32 1, %s579_s9   ;;  %p860_p10 = scmp.ne.s32.totalorder %s852_s24, 0 }
 0x17b   : > { %p861_p12 = scmp.ge.s32.totalorder %s599_s14, 2  ;;  %s274_s30 = scalar_lea.sflag [#allocation5], %s273_s21 }
 0x17d   : > { %p398_p1 = pnand %p861_p12, %p860_p10 }
 0x17f   : > { %574 = dma.done.wait (!%p398_p1), %s274_s30, 128  }
 0x180   : > { %576 = vsyncadd (!%p398_p1), %s274_s30, 4294967168  ;;  %s21_s14 = sadd.s32 1, %s599_s14   ;;  %s862_s9 = smov %s583_s10 }
 0x181   : > { %p18_p2 = scmp.ge.s32.totalorder %s21_s14, 4   ;;  %s863_s10 = smov %s587_s11 }
 0x182   : > { %s864_s11 = smov %s675_s23  ;;  %s865_s12 = smov %s595_s13 }
 0x183   : > { %s866_s13 = smov %s868_s17  ;;  %20 = sbr.rel (!%p18_p2) target bundleno = 8 (0x8), region = 94 }
 0x18a   :  { %279 = vsyncpa [#allocation4], 1 }
 0x18b   :  { %281 = vsyncpa [#allocation4 + $0x1], 1 }
 0x18c   :  { %282 = vsyncpa [#allocation7], 1 }
 0x18d   :  { %284 = vsyncpa [#allocation7 + $0x1], 1 }
 0x18e   :  { %285 = vsyncpa [#allocation5], 1 }
 0x18f   :  { %287 = vsyncpa [#allocation5 + $0x1], 1 }

</bundles_post_ra>
